<compile_context>
chip_gen: v6e
topology: v6e:2x2x1
jax: 0.10.0
libtpu: 0.0.40
codegen_flags: <defaults>
</compile_context>

<pallas_src>
import jax
import jax.numpy as jnp
from jax.experimental import pallas as pl
from jax.experimental.pallas import tpu as pltpu

_LN_EPS = 1e-5
_MIN_GRID_STEPS = 8  # >=2 keeps both v7x TCs busy; >=4-8 keeps pipelining alive


def _round_up(n, m):
    return -(-n // m) * m


def _vmem_capacity_bytes():
    """Physical VMEM per core (generation-aware); conservative fallback = v7x."""
    try:
        info = pltpu.get_tpu_info()
        for name in ("vmem_capacity_bytes", "vmem_size_bytes", "vmem_bytes"):
            v = getattr(info, name, None)
            if v:
                return int(v)
    except Exception:
        pass
    return 64 << 20


def _vmem_need_bytes(tb, d_in, hidden, x_itemsize, weight_bytes):
    x_bufs = 3 * tb * d_in * x_itemsize       # Buffered(3) x stream
    out_bufs = 2 * tb * 512                   # (TB,1) f32 block tiles pad to (8,128)
    interm = 4 * tb * max(hidden, 128) * 4    # h / hn / h2 f32 live values + slack
    return 2 * weight_bytes + x_bufs + out_bufs + interm


def _choose_tb(batch, block_batch):
    # Aim for >= _MIN_GRID_STEPS grid steps, capped by block_batch, multiple of 8.
    tb_steps = _round_up(max(1, -(-batch // _MIN_GRID_STEPS)), 8)
    return max(8, min(_round_up(block_batch, 8), tb_steps))


def _head_kernel(x_ref, w1_ref, b1_ref, g2_ref, be2_ref,
                 w2_ref, b2_ref, w3_ref, b3_ref, o_ref):
    """One batch tile: layer1+ReLU -> LayerNorm -> (dropout=id) -> layer2+ReLU
    -> layer3 -> sigmoid."""
    # ---- layer1 + ReLU (x is already in matmul dtype; f32 accumulation) ----
    h = jnp.dot(x_ref[...], w1_ref[...],
                preferred_element_type=jnp.float32) + b1_ref[...]
    h = jnp.maximum(h, 0.0)

    # ---- LayerNorm over hidden dim (f32, two-pass variance like nn.LayerNorm) --
    mu = jnp.mean(h, axis=-1, keepdims=True)
    d = h - mu
    var = jnp.mean(d * d, axis=-1, keepdims=True)
    hn = d * jax.lax.rsqrt(var + _LN_EPS) * g2_ref[...] + be2_ref[...]
    # dropout: identity (eval semantics)
    # TODO(synk): training-mode dropout needs pltpu.prng_seed/prng_random_bits.

    # ---- layer2 + ReLU (bf16 MXU operands, f32 accumulation) ----
    h2 = jnp.dot(hn.astype(w2_ref.dtype), w2_ref[...],
                 preferred_element_type=jnp.float32) + b2_ref[...]
    h2 = jnp.maximum(h2, 0.0)

    # ---- layer3 (single output column) + sigmoid, all f32 ----
    # w3 is a (1, H) row; VPU multiply + XLU lane-reduce replaces the degenerate
    # N=1 matmul and lets the output block be (TB, 1): 4 B/row HBM writeback.
    logit = jnp.sum(h2 * w3_ref[...], axis=-1, keepdims=True) + b3_ref[...]
    o_ref[...] = jax.nn.sigmoid(logit).astype(o_ref.dtype)


def _build_specs(tb, d_in, hidden, use_pipeline_modes):
    if use_pipeline_modes:
        x_spec = pl.BlockSpec((tb, d_in), lambda i: (i, 0),
                              pipeline_mode=pl.Buffered(3))

        def const(shape):
            return pl.BlockSpec(shape, lambda i: (0, 0),
                                pipeline_mode=pl.Buffered(1))
    else:
        x_spec = pl.BlockSpec((tb, d_in), lambda i: (i, 0))

        def const(shape):
            return pl.BlockSpec(shape, lambda i: (0, 0))

    in_specs = [
        x_spec,                    # x tile (streamed per grid step)
        const((d_in, hidden)),     # w1 (VMEM-resident)
        const((1, hidden)),        # b1
        const((1, hidden)),        # gamma2
        const((1, hidden)),        # beta2
        const((hidden, hidden)),   # w2
        const((1, hidden)),        # b2
        const((1, hidden)),        # w3 row (f32)
        const((1, 1)),             # b3
    ]
    out_specs = pl.BlockSpec((tb, 1), lambda i: (i, 0))
    return in_specs, out_specs


def prepare_params(params, matmul_dtype=jnp.bfloat16):
    """One-time weight prep (casts only), hoisted out of the hot call path."""
    return {
        "w1": params["w1"].astype(matmul_dtype),              # (D_in, H)
        "b1": params["b1"].astype(jnp.float32),                # (1, H)
        "g2": params["g2"].astype(jnp.float32),                # (1, H)
        "be2": params["be2"].astype(jnp.float32),              # (1, H)
        "w2": params["w2"].astype(matmul_dtype),               # (H, H)
        "b2": params["b2"].astype(jnp.float32),                # (1, H)
        "w3r": params["w3"].reshape(1, -1).astype(jnp.float32),  # (1, H) row
        "b3": params["b3"].reshape(1, 1).astype(jnp.float32),  # (1, 1)
    }


def histo_classifier_head(x, prepared, *, block_batch=2048):
    """x: (B, D_in). prepared: output of prepare_params. Returns (B, 1) f32."""
    B, D_in = x.shape
    H = prepared["w1"].shape[1]
    mm_dtype = prepared["w1"].dtype

    # Host-side bf16 cast of x (halves kernel HBM read); no-op if the caller
    # already supplies x in the matmul dtype.
    if x.dtype != mm_dtype:
        x = x.astype(mm_dtype)

    TB = _choose_tb(B, block_batch)

    weight_bytes = sum(int(a.size) * a.dtype.itemsize for a in prepared.values())
    budget = _vmem_capacity_bytes() * 3 // 4
    while (_vmem_need_bytes(TB, D_in, H, x.dtype.itemsize, weight_bytes) > budget
           and TB > 8):
        TB = max(8, _round_up(TB // 2, 8))
    need = _vmem_need_bytes(TB, D_in, H, x.dtype.itemsize, weight_bytes)
    vmem_limit = int(min(budget, max(2 * need, 32 << 20)))

    grid = (pl.cdiv(B, TB),)

    cost = pl.CostEstimate(
        flops=2 * B * (D_in * H + H * H + H),
        transcendentals=3 * B,  # rsqrt + sigmoid per row (+ slack)
        bytes_accessed=int(x.size * x.dtype.itemsize + weight_bytes + B * 4))

    args = (x, prepared["w1"], prepared["b1"], prepared["g2"], prepared["be2"],
            prepared["w2"], prepared["b2"], prepared["w3r"], prepared["b3"])

    last_err = None
    for use_pm in (True, False):   # fall back if pipeline_mode is unsupported
        try:
            in_specs, out_specs = _build_specs(TB, D_in, H, use_pm)
            return pl.pallas_call(
                _head_kernel,
                out_shape=jax.ShapeDtypeStruct((B, 1), jnp.float32),
                grid=grid,
                in_specs=in_specs,
                out_specs=out_specs,
                compiler_params=pltpu.CompilerParams(
                    dimension_semantics=("parallel",),
                    vmem_limit_bytes=vmem_limit),
                cost_estimate=cost,
            )(*args)
        except Exception as e:  # noqa: BLE001 - retry without pipeline_mode
            last_err = e
    raise last_err


def init_params(key, dim_input, hidden_dim):
    """Deterministic synthetic params matching nn.Linear / nn.LayerNorm shapes."""
    ks = jax.random.split(key, 6)
    scale1 = 1.0 / jnp.sqrt(dim_input)
    scaleh = 1.0 / jnp.sqrt(hidden_dim)
    return {
        # nn.Linear(dim_input, hidden): weight (H, D) -> stored transposed (D, H)
        "w1": jax.random.uniform(ks[0], (dim_input, hidden_dim), jnp.float32,
                                 -scale1, scale1),
        "b1": jax.random.uniform(ks[1], (1, hidden_dim), jnp.float32,
                                 -scale1, scale1),
        # nn.LayerNorm(hidden): weight=1, bias=0 at init
        "g2": jnp.ones((1, hidden_dim), jnp.float32),
        "be2": jnp.zeros((1, hidden_dim), jnp.float32),
        # nn.Linear(hidden, hidden)
        "w2": jax.random.uniform(ks[2], (hidden_dim, hidden_dim), jnp.float32,
                                 -scaleh, scaleh),
        "b2": jax.random.uniform(ks[3], (1, hidden_dim), jnp.float32,
                                 -scaleh, scaleh),
        # nn.Linear(hidden, 1)
        "w3": jax.random.uniform(ks[4], (hidden_dim, 1), jnp.float32,
                                 -scaleh, scaleh),
        "b3": jax.random.uniform(ks[5], (1, 1), jnp.float32,
                                 -scaleh, scaleh),
    }


def _reference(x, p, matmul_dtype=jnp.float32):
    """Pure-JAX reference; matmul_dtype=bfloat16 mirrors the kernel's math."""
    def mm(a, w):
        return jnp.dot(a.astype(matmul_dtype), w.astype(matmul_dtype),
                       preferred_element_type=jnp.float32)

    h = jnp.maximum(mm(x, p["w1"]) + p["b1"], 0.0)
    mu = jnp.mean(h, -1, keepdims=True)
    d = h - mu
    var = jnp.mean(d * d, -1, keepdims=True)
    hn = d * jax.lax.rsqrt(var + _LN_EPS) * p["g2"] + p["be2"]
    h2 = jnp.maximum(mm(hn, p["w2"]) + p["b2"], 0.0)
    logit = jnp.dot(h2, p["w3"]) + p["b3"]      # layer3 in f32 (matches kernel)
    return jax.nn.sigmoid(logit)


if __name__ == "__main__":
    # Small shapes consistent with the module; B=10 with TB=8 exercises a
    # 2-step batch grid including a ragged (non-divisible) tail block.
    B, D_IN, HIDDEN = 10, 32, 32
    key = jax.random.PRNGKey(0)
    kx, kp = jax.random.split(key)
    x = jax.random.normal(kx, (B, D_IN), jnp.float32)
    params = init_params(kp, D_IN, HIDDEN)
    prepared = prepare_params(params)           # one-time weight prep

    out = histo_classifier_head(x, prepared)
    out = jax.block_until_ready(out)
    assert out.shape == (B, 1)

    ref_matched = _reference(x, params, matmul_dtype=jnp.bfloat16)
    ref_f32 = _reference(x, params, matmul_dtype=jnp.float32)
    assert jnp.allclose(out, ref_matched, atol=1e-4, rtol=1e-4), \
        "mismatch vs matched-precision reference"
    assert jnp.allclose(out, ref_f32, atol=2e-2, rtol=2e-2), \
        "mismatch vs f32 reference"
    print("KERNEL_OK")
</pallas_src>

<mosaic_0001>
module attributes {stable_mosaic.version = 11 : i64} {
  func.func @_head_kernel(%arg0: i32, %arg1: memref<8x32xbf16, #tpu.memory_space<vmem>>, %arg2: memref<32x32xbf16, #tpu.memory_space<vmem>>, %arg3: memref<1x32xf32, #tpu.memory_space<vmem>>, %arg4: memref<1x32xf32, #tpu.memory_space<vmem>>, %arg5: memref<1x32xf32, #tpu.memory_space<vmem>>, %arg6: memref<32x32xbf16, #tpu.memory_space<vmem>>, %arg7: memref<1x32xf32, #tpu.memory_space<vmem>>, %arg8: memref<1x32xf32, #tpu.memory_space<vmem>>, %arg9: memref<1x1xf32, #tpu.memory_space<vmem>>, %arg10: memref<8x1xf32, #tpu.memory_space<vmem>>) attributes {dimension_semantics = [#tpu.dimension_semantics<parallel>], iteration_bounds = array<i64: 2>, scalar_prefetch = 0 : i64, scratch_operands = 0 : i64, tpu.core_type = #tpu.core_type<tc>, window_params = [{transform_indices = @transform_0, window_bounds = array<i64: 8, 32>}, {pipeline_mode = #tpu.pipeline_mode<synchronous>, transform_indices = @transform_1, window_bounds = array<i64: 32, 32>}, {pipeline_mode = #tpu.pipeline_mode<synchronous>, transform_indices = @transform_2, window_bounds = array<i64: 1, 32>}, {pipeline_mode = #tpu.pipeline_mode<synchronous>, transform_indices = @transform_3, window_bounds = array<i64: 1, 32>}, {pipeline_mode = #tpu.pipeline_mode<synchronous>, transform_indices = @transform_4, window_bounds = array<i64: 1, 32>}, {pipeline_mode = #tpu.pipeline_mode<synchronous>, transform_indices = @transform_5, window_bounds = array<i64: 32, 32>}, {pipeline_mode = #tpu.pipeline_mode<synchronous>, transform_indices = @transform_6, window_bounds = array<i64: 1, 32>}, {pipeline_mode = #tpu.pipeline_mode<synchronous>, transform_indices = @transform_7, window_bounds = array<i64: 1, 32>}, {pipeline_mode = #tpu.pipeline_mode<synchronous>, transform_indices = @transform_8, window_bounds = array<i64: 1, 1>}, {transform_indices = @transform_9, window_bounds = array<i64: 8, 1>}]} {
    %c0 = arith.constant 0 : index
    %c0_0 = arith.constant 0 : index
    %0 = vector.load %arg1[%c0, %c0_0] : memref<8x32xbf16, #tpu.memory_space<vmem>>, vector<8x32xbf16>
    %c0_1 = arith.constant 0 : index
    %c0_2 = arith.constant 0 : index
    %1 = vector.load %arg2[%c0_1, %c0_2] : memref<32x32xbf16, #tpu.memory_space<vmem>>, vector<32x32xbf16>
    %cst = arith.constant dense<0.000000e+00> : vector<8x32xf32>
    %2 = tpu.matmul %0, %1, %cst {dimension_numbers = #tpu.dot_dimension_numbers<[1], [0], [0], [1], [0, 0, 1, 1], [], []>} : vector<8x32xbf16>, vector<32x32xbf16>, vector<8x32xf32> -> vector<8x32xf32>
    %c0_3 = arith.constant 0 : index
    %c0_4 = arith.constant 0 : index
    %3 = vector.load %arg3[%c0_3, %c0_4] : memref<1x32xf32, #tpu.memory_space<vmem>>, vector<1x32xf32>
    %4 = vector.broadcast %3 : vector<1x32xf32> to vector<8x32xf32>
    %5 = arith.addf %2, %4 : vector<8x32xf32>
    %cst_5 = arith.constant 0.000000e+00 : f32
    %6 = vector.broadcast %cst_5 : f32 to vector<8x32xf32>
    %7 = arith.maximumf %5, %6 : vector<8x32xf32>
    %cst_6 = arith.constant dense<0.000000e+00> : vector<8xf32>
    %8 = vector.multi_reduction <add>, %7, %cst_6 [1] : vector<8x32xf32> to vector<8xf32>
    %9 = vector.shape_cast %8 : vector<8xf32> to vector<8x1xf32>
    %cst_7 = arith.constant 3.200000e+01 : f32
    %10 = vector.broadcast %cst_7 : f32 to vector<8x1xf32>
    %11 = arith.divf %9, %10 : vector<8x1xf32>
    %12 = vector.broadcast %11 : vector<8x1xf32> to vector<8x32xf32>
    %13 = arith.subf %7, %12 : vector<8x32xf32>
    %14 = arith.mulf %13, %13 : vector<8x32xf32>
    %cst_8 = arith.constant dense<0.000000e+00> : vector<8xf32>
    %15 = vector.multi_reduction <add>, %14, %cst_8 [1] : vector<8x32xf32> to vector<8xf32>
    %16 = vector.shape_cast %15 : vector<8xf32> to vector<8x1xf32>
    %cst_9 = arith.constant 3.200000e+01 : f32
    %17 = vector.broadcast %cst_9 : f32 to vector<8x1xf32>
    %18 = arith.divf %16, %17 : vector<8x1xf32>
    %cst_10 = arith.constant 9.99999974E-6 : f32
    %19 = vector.broadcast %cst_10 : f32 to vector<8x1xf32>
    %20 = arith.addf %18, %19 : vector<8x1xf32>
    %21 = math.rsqrt %20 : vector<8x1xf32>
    %22 = vector.broadcast %21 : vector<8x1xf32> to vector<8x32xf32>
    %23 = arith.mulf %13, %22 : vector<8x32xf32>
    %c0_11 = arith.constant 0 : index
    %c0_12 = arith.constant 0 : index
    %24 = vector.load %arg4[%c0_11, %c0_12] : memref<1x32xf32, #tpu.memory_space<vmem>>, vector<1x32xf32>
    %25 = vector.broadcast %24 : vector<1x32xf32> to vector<8x32xf32>
    %26 = arith.mulf %23, %25 : vector<8x32xf32>
    %c0_13 = arith.constant 0 : index
    %c0_14 = arith.constant 0 : index
    %27 = vector.load %arg5[%c0_13, %c0_14] : memref<1x32xf32, #tpu.memory_space<vmem>>, vector<1x32xf32>
    %28 = vector.broadcast %27 : vector<1x32xf32> to vector<8x32xf32>
    %29 = arith.addf %26, %28 : vector<8x32xf32>
    %30 = arith.truncf %29 : vector<8x32xf32> to vector<8x32xbf16>
    %c0_15 = arith.constant 0 : index
    %c0_16 = arith.constant 0 : index
    %31 = vector.load %arg6[%c0_15, %c0_16] : memref<32x32xbf16, #tpu.memory_space<vmem>>, vector<32x32xbf16>
    %cst_17 = arith.constant dense<0.000000e+00> : vector<8x32xf32>
    %32 = tpu.matmul %30, %31, %cst_17 {dimension_numbers = #tpu.dot_dimension_numbers<[1], [0], [0], [1], [0, 0, 1, 1], [], []>} : vector<8x32xbf16>, vector<32x32xbf16>, vector<8x32xf32> -> vector<8x32xf32>
    %c0_18 = arith.constant 0 : index
    %c0_19 = arith.constant 0 : index
    %33 = vector.load %arg7[%c0_18, %c0_19] : memref<1x32xf32, #tpu.memory_space<vmem>>, vector<1x32xf32>
    %34 = vector.broadcast %33 : vector<1x32xf32> to vector<8x32xf32>
    %35 = arith.addf %32, %34 : vector<8x32xf32>
    %cst_20 = arith.constant 0.000000e+00 : f32
    %36 = vector.broadcast %cst_20 : f32 to vector<8x32xf32>
    %37 = arith.maximumf %35, %36 : vector<8x32xf32>
    %c0_21 = arith.constant 0 : index
    %c0_22 = arith.constant 0 : index
    %38 = vector.load %arg8[%c0_21, %c0_22] : memref<1x32xf32, #tpu.memory_space<vmem>>, vector<1x32xf32>
    %39 = vector.broadcast %38 : vector<1x32xf32> to vector<8x32xf32>
    %40 = arith.mulf %37, %39 : vector<8x32xf32>
    %cst_23 = arith.constant dense<0.000000e+00> : vector<8xf32>
    %41 = vector.multi_reduction <add>, %40, %cst_23 [1] : vector<8x32xf32> to vector<8xf32>
    %42 = vector.shape_cast %41 : vector<8xf32> to vector<8x1xf32>
    %c0_24 = arith.constant 0 : index
    %c0_25 = arith.constant 0 : index
    %43 = vector.load %arg9[%c0_24, %c0_25] : memref<1x1xf32, #tpu.memory_space<vmem>>, vector<1x1xf32>
    %44 = vector.broadcast %43 : vector<1x1xf32> to vector<8x1xf32>
    %45 = arith.addf %42, %44 : vector<8x1xf32>
    %46 = arith.negf %45 : vector<8x1xf32>
    %47 = math.exp %46 : vector<8x1xf32>
    %cst_26 = arith.constant 1.000000e+00 : f32
    %48 = vector.broadcast %cst_26 : f32 to vector<8x1xf32>
    %49 = arith.addf %48, %47 : vector<8x1xf32>
    %50 = arith.divf %48, %49 : vector<8x1xf32>
    %c0_27 = arith.constant 0 : index
    %c0_28 = arith.constant 0 : index
    %51 = vector.load %arg10[%c0_27, %c0_28] : memref<8x1xf32, #tpu.memory_space<vmem>>, vector<8x1xf32>
    tpu.vector_store %arg10[%c0_27, %c0_28], %50 {strides = array<i32>} : memref<8x1xf32, #tpu.memory_space<vmem>>, vector<8x1xf32>,
    return
  }
  func.func @transform_0(%arg0: i32) -> (i32, i32) {
    %c0_i32 = arith.constant 0 : i32
    %c0_i32_0 = arith.constant 0 : i32
    return %arg0, %c0_i32 : i32, i32
  }
  func.func @transform_1(%arg0: i32) -> (i32, i32) {
    %c0_i32 = arith.constant 0 : i32
    %c0_i32_0 = arith.constant 0 : i32
    %c0_i32_1 = arith.constant 0 : i32
    return %c0_i32, %c0_i32_0 : i32, i32
  }
  func.func @transform_2(%arg0: i32) -> (i32, i32) {
    %c0_i32 = arith.constant 0 : i32
    %c0_i32_0 = arith.constant 0 : i32
    %c0_i32_1 = arith.constant 0 : i32
    return %c0_i32, %c0_i32_0 : i32, i32
  }
  func.func @transform_3(%arg0: i32) -> (i32, i32) {
    %c0_i32 = arith.constant 0 : i32
    %c0_i32_0 = arith.constant 0 : i32
    %c0_i32_1 = arith.constant 0 : i32
    return %c0_i32, %c0_i32_0 : i32, i32
  }
  func.func @transform_4(%arg0: i32) -> (i32, i32) {
    %c0_i32 = arith.constant 0 : i32
    %c0_i32_0 = arith.constant 0 : i32
    %c0_i32_1 = arith.constant 0 : i32
    return %c0_i32, %c0_i32_0 : i32, i32
  }
  func.func @transform_5(%arg0: i32) -> (i32, i32) {
    %c0_i32 = arith.constant 0 : i32
    %c0_i32_0 = arith.constant 0 : i32
    %c0_i32_1 = arith.constant 0 : i32
    return %c0_i32, %c0_i32_0 : i32, i32
  }
  func.func @transform_6(%arg0: i32) -> (i32, i32) {
    %c0_i32 = arith.constant 0 : i32
    %c0_i32_0 = arith.constant 0 : i32
    %c0_i32_1 = arith.constant 0 : i32
    return %c0_i32, %c0_i32_0 : i32, i32
  }
  func.func @transform_7(%arg0: i32) -> (i32, i32) {
    %c0_i32 = arith.constant 0 : i32
    %c0_i32_0 = arith.constant 0 : i32
    %c0_i32_1 = arith.constant 0 : i32
    return %c0_i32, %c0_i32_0 : i32, i32
  }
  func.func @transform_8(%arg0: i32) -> (i32, i32) {
    %c0_i32 = arith.constant 0 : i32
    %c0_i32_0 = arith.constant 0 : i32
    %c0_i32_1 = arith.constant 0 : i32
    return %c0_i32, %c0_i32_0 : i32, i32
  }
  func.func @transform_9(%arg0: i32) -> (i32, i32) {
    %c0_i32 = arith.constant 0 : i32
    %c0_i32_0 = arith.constant 0 : i32
    return %arg0, %c0_i32 : i32, i32
  }
}

</mosaic_0001>

<bundles_post_ra>
// kernel: tpu_custom_call.1
= control target key start
LH: loop header
LB: loop body
LE: loop exit
PB: predicated region body
PF: predicated region fallthrough
CT: control target
= control target key end

     0   :  { %s1109_s0 = inlined_call_operand.hbm [shape: bf16[10,32], index: 0, kind: input, shape index: {}]   ;;  %s1110_s1 = inlined_call_operand.hbm [shape: bf16[32,32], index: 1, kind: input, shape index: {}]   ;;  %s1111_s2 = inlined_call_operand.vmem [shape: f32[1,32], index: 2, kind: input, shape index: {}]   ;;  %s1112_s3 = inlined_call_operand.vmem [shape: f32[1,32], index: 3, kind: input, shape index: {}]   ;;  %s1113_s4 = inlined_call_operand.vmem [shape: f32[1,32], index: 4, kind: input, shape index: {}]   ;;  %s1114_s5 = inlined_call_operand.hbm [shape: bf16[32,32], index: 5, kind: input, shape index: {}]   ;;  %s1115_s6 = inlined_call_operand.vmem [shape: f32[1,32], index: 6, kind: input, shape index: {}]   ;;  %s1116_s7 = inlined_call_operand.vmem [shape: f32[1,32], index: 7, kind: input, shape index: {}]   ;;  %s1117_s8 = inlined_call_operand.<no memory space> [shape: f32[1,1], index: 8, kind: input, shape index: {}]   ;;  %s1118_s9 = inlined_call_operand.vmem [shape: f32[10,1], index: 9, kind: output, shape index: {}]  }
   0x1   :  { %v14_v0 = vstv %s1117_s8 }
   0x2   :  { %15 = vst [vmem:[#allocation2] sm:$0x1] %v14_v0 }
   0x3   :  { %16 = vsyncpa [#allocation4], 0 }
   0x4   :  { %18 = vsyncpa [#allocation4 + $0x1], 0 }
   0x5   :  { %19 = vsyncpa [#allocation6], 0  ;;  %s961_s11 = smov 0   ;;  %s963_s12 = smov 0  }
   0x6   :  { %s965_s13 = smov 0   ;;  %s967_s14 = smov 0  }
   0x7 LB: > { %s980_s8 = sadd.s32 4294967295, %s899_s14   ;;  %p45_p0 = scmp.ne.s32.totalorder %s891_s12, %s887_s11  ;;  %s899_s14 = sphi %s967_s14, %s1133_s14   ;;  %s895_s13 = sphi %s965_s13, %s1132_s13   ;;  %s891_s12 = sphi %s963_s12, %s1131_s12   ;;  %s887_s11 = sphi %s961_s11, %s1130_s11  }
   0x8   : > { %p1119_p1 = scmp.eq.s32.totalorder %s980_s8, 0  ;;  %p659_p2 = scmp.ge.s32.totalorder %s899_s14, 1 }
   0x9   : > { %p250_p3 = scmp.lt.s32.totalorder %s899_s14, 3  ;;  %s901_s17 = smov [#allocation5]  }
   0xa   : > { %p988_p4 = por %p1119_p1, %p45_p0  ;;  %s262_s18 = sshll.u32 %s901_s17, 4  ;;  %s263_s18 = int_to_ptr.vmem [resolvable:$true] %s262_s18 }
   0xb   : > { %p992_p5 = pnand %p659_p2, %p250_p3  ;;  %s902_s20 = smov [#allocation7]  }
   0xc   : > { %s1122_s15 = scalar_select %p988_p4, 1, 0 }
   0xd   : > { %s1123_s16 = scalar_select %p992_p5, 1, 0 }
   0xe   : > { %p717_p6 = pneg %p992_p5  ;;  %s284_s21 = sshll.u32 %s902_s20, 4  ;;  %s285_s21 = int_to_ptr.vmem [resolvable:$true] %s284_s21 }
   0xf   : > { %s792_s22 = scalar_lea.vmem %s263_s18, 256  ;;  %p800_p12 = scmp.lt.s32.totalorder %s263_s18, %s263_s18 }
  0x10   : > { %p1000_p7 = pnand %p717_p6, %p1119_p1  ;;  %p793_p9 = scmp.ne.s32.totalorder %s263_s18, %s792_s22 }
  0x11   : > { %p801_p13 = scmp.lt.s32.totalorder %s792_s22, %s792_s22 }
  0x12   : > { %p783_p8 = pneg %p1000_p7 }
  0x13   : > { %p802_p0 = por %p801_p13, %p800_p12 }
  0x14   : > { %p795_p10 = pnand %p793_p9, %p783_p8 }
  0x16   : > { %p796_p11 = pneg %p795_p10 }
  0x18   : > { %p803_p2 = pnand %p802_p0, %p796_p11 }
  0x1a   : > { %806 = shalt.err (!%p803_p2)
}
  0x1b   : > { %s903_s23 = smov 64   ;;  %s904_s24 = smov 4  }
  0x1c   : > { %720 = dma.hbm_to_vmem [thread:$0]  (!%p1000_p7), %s1110_s1, 256, %s263_s18, [#allocation6], %s903_s23, %s903_s23, %s904_s24  }
  0x1d   : > { %s818_s27 = scalar_lea.vmem %s285_s21, 256  ;;  %p826_p10 = scmp.lt.s32.totalorder %s285_s21, %s285_s21 }
  0x1e   : > { %p819_p3 = scmp.ne.s32.totalorder %s285_s21, %s818_s27  ;;  %p827_p1 = scmp.lt.s32.totalorder %s818_s27, %s818_s27 }
  0x20   : > { %p821_p6 = pnand %p819_p3, %p783_p8  ;;  %p828_p12 = por %p827_p1, %p826_p10 }
  0x22   : > { %p822_p9 = pneg %p821_p6 }
  0x24   : > { %p829_p11 = pnand %p828_p12, %p822_p9 }
  0x26   : > { %832 = shalt.err (!%p829_p11)
}
  0x27   : > { %723 = dma.hbm_to_vmem [thread:$0]  (!%p1000_p7), %s1114_s5, 256, %s285_s21, [#allocation6], %s903_s23, %s903_s23, %s904_s24  }
  0x28   : > { %s1023_s30 = sadd.s32 1, %s899_s14   ;;  %s32_s10 = sadd.s32 1, %s895_s13 }
  0x29   : > { %s29_s11 = ssub.s32 %s899_s14, %s1023_s30  ;;  %p39_p1 = scmp.ne.s32.totalorder %s895_s13, %s891_s12 }
  0x2a   : > { %p30_p8 = scmp.eq.s32.totalorder %s29_s11, 0  ;;  %p40_p13 = scmp.eq.s32.totalorder %s899_s14, 0 }
  0x2b   : > { %p730_p0 = scmp.lt.s32.totalorder %s899_s14, 2  ;;  %s307_s17 = sand.u32 1, %s895_s13  }
  0x2c   : > { %s1034_s18 = scalar_select %p30_p8, %s895_s13, %s32_s10  }
  0x2d   : > { %p41_p2 = por %p40_p13, %p39_p1  ;;  %s663_s19 = sshll.u32 %s307_s17, 2 }
  0x2e   : > { %s664_s20 = sshll.u32 %s899_s14, 6  ;;  %s311_s21 = scalar_lea.vmem [#allocation3], %s663_s19 }
  0x2f   : > { %s1040_s26 = scalar_lea.hbm %s1109_s0, %s664_s20  ;;  %s318_s23 = sshll.u32 %s311_s21, 4  ;;  %s319_s23 = int_to_ptr.vmem [resolvable:$true] %s318_s23 }
  0x30   : > { %p1042_p7 = pnand %p730_p0, %p41_p2  ;;  %s308_s27 = scalar_lea.sflag [#allocation4], %s307_s17 }
  0x31   : > { %s833_s28 = scalar_lea.hbm %s1040_s26, 64  ;;  %s838_s10 = scalar_lea.hbm %s1109_s0, 128 }
  0x32   : > { %p834_p3 = scmp.ne.s32.totalorder %s1040_s26, %s833_s28  ;;  %p835_p6 = pneg %p1042_p7 }
  0x33   : > { %p839_p12 = scmp.lt.s32.totalorder %s1040_s26, %s1109_s0  ;;  %p840_p11 = scmp.lt.s32.totalorder %s838_s10, %s833_s28 }
  0x34   : > { %p836_p9 = pnand %p835_p6, %p834_p3 }
  0x35   : > { %p841_p1 = por %p840_p11, %p839_p12 }
  0x36   : > { %p837_p10 = pneg %p836_p9 }
  0x38   : > { %p842_p8 = pnand %p841_p1, %p837_p10 }
  0x3a   : > { %845 = shalt.err (!%p842_p8)
}
  0x3b   : > { %s846_s20 = scalar_lea.vmem %s319_s23, 64  ;;  %s905_s17 = smov [#allocation3]  }
  0x3c   : > { %p847_p13 = scmp.ne.s32.totalorder %s319_s23, %s846_s20  ;;  %s851_s22 = sshll.u32 %s905_s17, 4  ;;  %s852_s22 = int_to_ptr.vmem [resolvable:$false] %s851_s22 }
  0x3d   : > { %s853_s25 = scalar_lea.vmem %s852_s22, 128  ;;  %p854_p3 = scmp.lt.s32.totalorder %s319_s23, %s852_s22 }
  0x3e   : > { %p849_p0 = pnand %p847_p13, %p835_p6  ;;  %p855_p9 = scmp.lt.s32.totalorder %s853_s25, %s846_s20 }
  0x40   : > { %p850_p2 = pneg %p849_p0  ;;  %p856_p4 = por %p855_p9, %p854_p3 }
  0x42   : > { %p857_p5 = pnand %p856_p4, %p850_p2 }
  0x44   : > { %860 = shalt.err (!%p857_p5)
}
  0x45   : > { %727 = dma.hbm_to_vmem [thread:$0]  (!%p1042_p7), %s1040_s26, 64, %s319_s23, %s308_s27  }
  0x46   : > { %p1126_p10 = scmp.ne.s32.totalorder %s1123_s16, 0 }
  0x47   : > { %s329_s21 = sand.u32 (!%p1126_p10), 1, %s891_s12   ;;  %p1127_p6 = scmp.ne.s32.totalorder (!%p1126_p10), %s1122_s15, 0 }
  0x48   : > { %327 = sbr.rel (%p1126_p10) target bundleno = 971 (0x3cb), region = 56  ;;  %s666_s28 = sshll.u32 (!%p1126_p10), %s329_s21, 2 }
  0x49   : > { %s330_s14 = scalar_lea.sflag (!%p1126_p10), [#allocation4], %s329_s21  ;;  %s333_s29 = scalar_lea.vmem (!%p1126_p10), [#allocation3], %s666_s28 }
  0x4d   : > { %878 = dma.done.wait (%p1127_p6), %s330_s14, 64  }
  0x4e   : > { %880 = vsyncadd (%p1127_p6), %s330_s14, 4294967232  ;;  %p1128_p4 = scmp.eq.s32.totalorder %s980_s8, 0 }
  0x50   : > { %882 = dma.done.wait (%p1128_p4), [#allocation6], 512   ;;  %p1129_p5 = pmov %p1128_p4 }
  0x51   : > { %v906_v1 = vmov 0.0   ;;  %vm907_vm0 = vmmov 0   ;;  %v771_v2 = vld [vmem:[#allocation5 + $0x8] sm:$0xff]   ;;  %v772_v3 = vld [vmem:[#allocation5] sm:$0xff]   ;;  %v380_v4 = vld [vmem:[%s333_s29] sm:$0xf] }
  0x52   : > { %884 = vsyncadd (%p1129_p5), [#allocation6], 4294966784  ;;  %691 = vmatprep.subr.bf16.mxu0 %v906_v1  ;;  %695 = vmatprep.mubr.msk.bf16.mxu0 %vm907_vm0, %v906_v1  ;;  %vm404_vm1 = vcmask 261120   ;;  %v670_v5 = vld [vmem:[%s1111_s2] ss:$0 sm:$0xff]  ;;  %v773_v18 = vld [vmem:[#allocation7 + $0x8] sm:$0xff]  }
  0x53   : > { %699 = vmatprep.subr.bf16.mxu1 %v906_v1  ;;  %703 = vmatprep.mubr.msk.bf16.mxu1 %vm907_vm0, %v906_v1  ;;  %v774_v19 = vld [vmem:[#allocation7] sm:$0xff]   ;;  %p375_p7 = scmp.lt.s32.totalorder %s980_s8, 1  ;;  %vm572_vm2 = vcmask 7168  }
  0x54   : > { %692 = vmatpush3.bf16.msra.mxu0 %v771_v2  ;;  %700 = vmatpush3.bf16.msra.mxu1 %v773_v18  ;;  %v674_v24 = vld [vmem:[%s1112_s3] ss:$0 sm:$0xff] }
  0x55   : > { %693 = vmatprep.subr.bf16.mxu0 %v906_v1  ;;  %701 = vmatprep.subr.bf16.mxu1 %v906_v1  ;;  %v675_v26 = vld [vmem:[%s1113_s4] ss:$0 sm:$0xff]  ;;  %s1135_s8 = smov (!%p375_p7, %s980_s8), 1 }
  0x56   : > { %v676_v30 = vld [vmem:[%s1115_s6] ss:$0 sm:$0xff]  ;;  %s669_s17 = sshll.u32 %s1135_s8, 3 }
  0x57   : > { %v680_v34 = vld [vmem:[%s1116_s7] ss:$0 sm:$0xff]  ;;  %s378_s21 = scalar_lea.vmem %s1118_s9, %s669_s17 }
  0x58   : > { %694 = vmatpush3.bf16.msra.mxu0 %v772_v3  ;;  %702 = vmatpush3.bf16.msra.mxu1 %v774_v19  ;;  %v681_v40 = vld [vmem:[#allocation2] ss:$0 sm:$0xff] }
  0x5b   : > { %696 = vmatmul.mubr.msk.bf16.vlgmr.msra.gmra.mxu0 %vm404_vm1, %v380_v4 }
 0x11b   : > { %v442_v6 = vpop.f32.mrf.mxu0 }
 0x11c   : > { %v443_v7 = vadd.f32 %v670_v5, %v442_v6 }
 0x11d   : > { %v697_v8 = vpop.f32.mrf.mxu0 }
 0x11e   : > { %v448_v9 = vmax.f32 %v443_v7, 0.0 }
 0x11f   : > { %v445_v10 = vpop.f32.mrf.mxu0 }
 0x120   : > { %v449_v11 = vsel %vm404_vm1, %v448_v9, 0.0 }
 0x121   : > { %450 = vadd.xlane.f32.xlu0 %v449_v11  ;;  %v698_v12 = vpop.f32.mrf.mxu0 }
 0x1aa   : > { %v451_v13 = vpop.xlane.xlu0 %450 }
 0x1ab   : > { %v453_v14 = vmul.f32 0.03125, %v451_v13 }
 0x1ad   : > { %v454_v15 = vsub.f32 %v448_v9, %v453_v14 }
 0x1af   : > { %v455_v16 = vmul.f32 %v454_v15, %v454_v15 }
 0x1b1   : > { %v456_v17 = vsel %vm404_vm1, %v455_v16, 0.0 }
 0x1b2   : > { %457 = vadd.xlane.f32.xlu0 %v456_v17 }
 0x23b   : > { %v458_v20 = vpop.xlane.xlu0 %457 }
 0x23c   : > { %v459_v21 = vmul.f32 0.03125, %v458_v20 }
 0x23e   : > { %v460_v22 = vadd.f32 1e-05, %v459_v21 }
 0x240   : > { %775 = vrsqrt.f32 %v460_v22 }
 0x24d   : > { %v776_v23 = vpop.eup %775 }
 0x24e   : > { %v462_v25 = vmul.f32 %v776_v23, %v454_v15 }
 0x250   : > { %v470_v27 = vmul.f32 %v674_v24, %v462_v25 }
 0x252   : > { %v478_v28 = vadd.f32 %v675_v26, %v470_v27 }
 0x254   : > { %v479_v29 = vpack.c.bf16 %v478_v28, %v478_v28 }
 0x256   : > { %704 = vmatmul.mubr.msk.bf16.vlgmr.msra.gmra.mxu1 %vm404_vm1, %v479_v29 }
 0x316   : > { %v540_v31 = vpop.f32.mrf.mxu1 }
 0x317   : > { %v541_v32 = vadd.f32 %v676_v30, %v540_v31 }
 0x318   : > { %v705_v33 = vpop.f32.mrf.mxu1 }
 0x319   : > { %v546_v35 = vmax.f32 %v541_v32, 0.0 }
 0x31a   : > { %v543_v36 = vpop.f32.mrf.mxu1 }
 0x31b   : > { %v554_v37 = vmul.f32 %v680_v34, %v546_v35 }
 0x31c   : > { %v706_v38 = vpop.f32.mrf.mxu1 }
 0x31d   : > { %v555_v39 = vsel %vm404_vm1, %v554_v37, 0.0 }
 0x31e   : > { %556 = vadd.xlane.f32.xlu1 %v555_v39 }
 0x3a7   : > { %v557_v41 = vpop.xlane.xlu1 %556 }
 0x3a8   : > { %v565_v42 = vadd.f32 %v681_v40, %v557_v41 }
 0x3aa   : > { %v682_v43 = vmul.f32 -1.442695, %v565_v42 }
 0x3ac   : > { %777 = vpow2.f32 %v682_v43 }
 0x3b9   : > { %v778_v44 = vpop.eup %777 }
 0x3ba   : > { %v569_v45 = vadd.f32 1.0, %v778_v44 }
 0x3bc   : > { %779 = vrcp.f32 %v569_v45 }
 0x3c9   : > { %v780_v46 = vpop.eup %779 }
 0x3ca   : > { %573 = vst.msk [vmem:[%s378_s21] sm:$0xff] %vm572_vm2, %v780_v46 }
 0x3cb PF: > { %p22_p12 = scmp.ge.s32.totalorder %s1023_s30, 4   ;;  %s1130_s11 = smov %s891_s12 }
 0x3cc   : > { %s1131_s12 = smov %s895_s13  ;;  %s1132_s13 = smov %s1034_s18 }
 0x3cd   : > { %s1133_s14 = smov %s1023_s30  ;;  %24 = sbr.rel (!%p22_p12) target bundleno = 7 (0x7), region = 104 }
 0x3d2   :  { %593 = vsyncpa [#allocation4], 1 }
 0x3d3   :  { %595 = vsyncpa [#allocation4 + $0x1], 1 }
 0x3d4   :  { %596 = vsyncpa [#allocation6], 1 }

</bundles_post_ra>
